<compile_context>
chip_gen: v7x
topology: tpu7x:2x2x1
jax: 0.10.0
libtpu: 0.0.40
codegen_flags: <defaults>
</compile_context>

<pallas_src>
import math

import jax
import jax.numpy as jnp
from jax.experimental import pallas as pl
from jax.experimental.pallas import tpu as pltpu

_BLOCK_BUDGET_BYTES = 4 << 20      # per-block budget, safe for v7x / v6e / v5e
_VMEM_LIMIT_CAP = 48 << 20         # below v7x's 64 MiB physical VMEM


def _add_bias_kernel(bias_ref, x_ref, o_ref):
    """bias_ref: (rt, L) float32 tile holding 0.1*face + 0.1*pe (kept in f32 so
    low-precision inputs are not double-rounded).
    x_ref / o_ref: (bt, rt, L) tile of the current (batch-tile, row-tile).
    Pure load-add-store; no transcendentals in the hot loop."""
    x = x_ref[...].astype(jnp.float32)
    o_ref[...] = (x + bias_ref[...][None, :, :]).astype(o_ref.dtype)


def _positional_bias(face_weights, F, C, H, W):
    """0.1*face_emb + 0.1*pe as float32, shape (F, C, H, W).
    Plain-JAX glue, computed once (batch independent, cacheable)."""
    y_pos = jnp.linspace(-1.0, 1.0, H, dtype=jnp.float32)
    x_pos = jnp.linspace(-1.0, 1.0, W, dtype=jnp.float32)
    y_grid, x_grid = jnp.meshgrid(y_pos, x_pos, indexing="ij")        # (H, W)

    # Per-channel frequency: even channel i -> sin(x * 10000^(-i/C)),
    # odd channel i+1 -> cos(y * 10000^(-i/C)); trailing odd-C channel stays 0.
    c_idx = jnp.arange(C)
    c_even = (c_idx - (c_idx % 2)).astype(jnp.float32)
    freq = jnp.exp(c_even * (-(math.log(10000.0) / C)))               # (C,)
    is_even = (c_idx % 2) == 0
    has_pair = c_idx < (C - 1)

    sin_part = jnp.sin(x_grid[None, :, :] * freq[:, None, None])      # (C, H, W)
    cos_part = jnp.cos(y_grid[None, :, :] * freq[:, None, None])
    pe = jnp.where(is_even[:, None, None],
                   jnp.where(has_pair[:, None, None], sin_part, 0.0),
                   cos_part)

    face = face_weights[:F].astype(jnp.float32)                       # (F, C)
    return 0.1 * face[:, :, None, None] + 0.1 * pe[None, :, :, :]     # f32


def _choose_tiles(B, R, L, x_itemsize, block_budget=_BLOCK_BUDGET_BYTES):
    """Pick (bt, rt): batch-tile and row-tile for block shape (bt, rt, L)."""
    # dtype-aware sublane alignment: 8 for f32, 16 for bf16/f16, 32 for int8/fp8.
    sub = max(8, 32 // max(1, x_itemsize))
    row_bytes = L * max(x_itemsize, 4)     # bias rows are f32; budget for the wider
    slab_bytes = R * row_bytes             # one batch element's worth
    if slab_bytes <= block_budget:
        rt = R                             # full row extent (satisfies block rule)
        bt = max(1, min(B, block_budget // slab_bytes))
        if B >= 2:
            # keep >= 2 grid steps so both v7x TensorCores get work
            bt = min(bt, -(-B // 2))
    else:
        bt = 1
        rt = (block_budget // row_bytes) // sub * sub
        rt = max(sub, min(rt, R))          # ragged last block handled by pl.cdiv grid
    return bt, rt


def cubemap_positional_encoding(x, face_weights, *, bias=None):
    """x: (B, F, C, H, W); face_weights: (6, C) embedding table.
    `bias` may be a precomputed float32 (F, C, H, W) array (cache it at init to
    avoid recomputing sin/cos per call)."""
    B, F, C, H, W = x.shape

    if bias is None:
        bias = _positional_bias(face_weights, F, C, H, W)
    bias = bias.astype(jnp.float32)

    # Lane-dense layout choice.
    if (H * W) % 128 != 0 and (C * H * W) % 128 == 0:
        R, L = F, C * H * W                # fold channels into lanes
    else:
        R, L = F * C, H * W
    bias2 = bias.reshape(R, L)
    x2 = x.reshape(B, R, L)

    bt, rt = _choose_tiles(B, R, L, x.dtype.itemsize)
    grid = (pl.cdiv(R, rt), pl.cdiv(B, bt))   # batch fastest -> bias tile stays put

    # Explicit VMEM limit: double-buffered x-in + out + bias tiles, plus slack.
    block_bytes = bt * rt * L * x.dtype.itemsize
    bias_bytes = rt * L * 4
    vmem_limit = int(min(_VMEM_LIMIT_CAP,
                         max(16 << 20, 4 * block_bytes + 2 * bias_bytes + (4 << 20))))

    out = pl.pallas_call(
        _add_bias_kernel,
        out_shape=jax.ShapeDtypeStruct((B, R, L), x.dtype),
        grid=grid,
        in_specs=[
            # constant along the fast (batch) grid axis -> fetched once per row tile
            pl.BlockSpec((rt, L), lambda r, b: (r, 0)),
            pl.BlockSpec((bt, rt, L), lambda r, b: (b, r, 0)),
        ],
        out_specs=pl.BlockSpec((bt, rt, L), lambda r, b: (b, r, 0)),
        compiler_params=pltpu.CompilerParams(
            dimension_semantics=("parallel", "parallel"),
            vmem_limit_bytes=vmem_limit),
    )(bias2, x2)
    return out.reshape(B, F, C, H, W)


def make_face_embeddings(embedding_dim):
    """Deterministic geometric init matching _init_face_embeddings()."""
    directions = jnp.array(
        [[0, 0, 1], [0, 0, -1], [-1, 0, 0], [1, 0, 0], [0, 1, 0], [0, -1, 0]],
        dtype=jnp.float32,
    )
    reps = embedding_dim // 3 + 1
    return jnp.tile(directions, (1, reps))[:, :embedding_dim]


def reference_forward(x, face_weights):
    """Pure-JAX mirror of the PyTorch forward, for correctness checking."""
    B, F, C, H, W = x.shape
    y_pos = jnp.linspace(-1.0, 1.0, H)
    x_pos = jnp.linspace(-1.0, 1.0, W)
    y_grid, x_grid = jnp.meshgrid(y_pos, x_pos, indexing="ij")
    pe = jnp.zeros((H, W, C), dtype=jnp.float32)
    for i in range(0, C, 2):
        if i < C - 1:
            freq = 1.0 / 10000 ** (i / C)
            pe = pe.at[..., i].set(jnp.sin(x_grid * freq))
            pe = pe.at[..., i + 1].set(jnp.cos(y_grid * freq))
    pe = jnp.transpose(pe, (2, 0, 1)).reshape(1, 1, C, H, W)
    face = face_weights[:F].reshape(1, F, C, 1, 1)
    return x + 0.1 * face + 0.1 * pe


if __name__ == "__main__":
    key = jax.random.PRNGKey(0)
    B, F, C, H, W = 2, 6, 4, 16, 16  # channels == embedding_dim of the module
    x = jax.random.normal(key, (B, F, C, H, W), dtype=jnp.float32)
    face_w = make_face_embeddings(C)

    # Precompute the bias once ("module init"); forward reuses it every call.
    bias = _positional_bias(face_w, F, C, H, W)

    out = cubemap_positional_encoding(x, face_w, bias=bias)
    out = jax.block_until_ready(out)

    ref = reference_forward(x, face_w)
    assert out.shape == ref.shape and out.dtype == ref.dtype
    assert jnp.allclose(out, ref, atol=1e-5, rtol=1e-5)
    print("KERNEL_OK")
</pallas_src>

<mosaic_0001>
module attributes {stable_mosaic.version = 11 : i64} {
  func.func @_add_bias_kernel(%arg0: i32, %arg1: i32, %arg2: memref<24x256xf32, #tpu.memory_space<vmem>>, %arg3: memref<1x24x256xf32, #tpu.memory_space<vmem>>, %arg4: memref<1x24x256xf32, #tpu.memory_space<vmem>>) attributes {dimension_semantics = [#tpu.dimension_semantics<parallel>, #tpu.dimension_semantics<parallel>], iteration_bounds = array<i64: 1, 2>, scalar_prefetch = 0 : i64, scratch_operands = 0 : i64, tpu.core_type = #tpu.core_type<tc>, window_params = [{transform_indices = @transform_0, window_bounds = array<i64: 24, 256>}, {transform_indices = @transform_1, window_bounds = array<i64: 1, 24, 256>}, {transform_indices = @transform_2, window_bounds = array<i64: 1, 24, 256>}]} {
    %c0 = arith.constant 0 : index
    %c0_0 = arith.constant 0 : index
    %c0_1 = arith.constant 0 : index
    %0 = vector.load %arg3[%c0, %c0_0, %c0_1] : memref<1x24x256xf32, #tpu.memory_space<vmem>>, vector<1x24x256xf32>
    %c0_2 = arith.constant 0 : index
    %c0_3 = arith.constant 0 : index
    %1 = vector.load %arg2[%c0_2, %c0_3] : memref<24x256xf32, #tpu.memory_space<vmem>>, vector<24x256xf32>
    %2 = vector.shape_cast %1 : vector<24x256xf32> to vector<1x24x256xf32>
    %3 = arith.addf %0, %2 : vector<1x24x256xf32>
    %c0_4 = arith.constant 0 : index
    %c0_5 = arith.constant 0 : index
    %c0_6 = arith.constant 0 : index
    %4 = vector.load %arg4[%c0_4, %c0_5, %c0_6] : memref<1x24x256xf32, #tpu.memory_space<vmem>>, vector<1x24x256xf32>
    tpu.vector_store %arg4[%c0_4, %c0_5, %c0_6], %3 {strides = array<i32>} : memref<1x24x256xf32, #tpu.memory_space<vmem>>, vector<1x24x256xf32>,
    return
  }
  func.func @transform_0(%arg0: i32, %arg1: i32) -> (i32, i32) {
    %c0_i32 = arith.constant 0 : i32
    %c0_i32_0 = arith.constant 0 : i32
    return %arg0, %c0_i32 : i32, i32
  }
  func.func @transform_1(%arg0: i32, %arg1: i32) -> (i32, i32, i32) {
    %c0_i32 = arith.constant 0 : i32
    %c0_i32_0 = arith.constant 0 : i32
    return %arg1, %arg0, %c0_i32 : i32, i32, i32
  }
  func.func @transform_2(%arg0: i32, %arg1: i32) -> (i32, i32, i32) {
    %c0_i32 = arith.constant 0 : i32
    %c0_i32_0 = arith.constant 0 : i32
    return %arg1, %arg0, %c0_i32 : i32, i32, i32
  }
}

</mosaic_0001>

<bundles_post_ra>
// kernel: tpu_custom_call.1
= control target key start
LH: loop header
LB: loop body
LE: loop exit
PB: predicated region body
PF: predicated region fallthrough
CT: control target
= control target key end

     0   :  { %7 = vsyncpa [#allocation3], 0  ;;  %s829_s0 = inlined_call_operand.hbm [shape: f32[24,256], index: 0, kind: input, shape index: {}]   ;;  %s830_s1 = inlined_call_operand.hbm [shape: f32[2,24,256], index: 1, kind: input, shape index: {}]   ;;  %s831_s2 = inlined_call_operand.hbm [shape: f32[2,24,256], index: 2, kind: output, shape index: {}]  }
   0x1   :  { %8 = vsyncpa [#allocation6], 0 }
   0x2   :  { %10 = vsyncpa [#allocation6 + $0x1], 0 }
   0x3   :  { %11 = vsyncpa [#allocation4], 0 }
   0x4   :  { %13 = vsyncpa [#allocation4 + $0x1], 0  ;;  %s610_s9 = smov 0   ;;  %s612_s10 = smov 0  }
   0x5   :  { %s614_s11 = smov 0   ;;  %s616_s12 = smov 0  }
   0x6   :  { %s618_s13 = smov 0   ;;  %s620_s14 = smov 0  }
   0x7 LB: > { %s350_s15 = sadd.s32 4294967295, %s586_s14   ;;  %s351_s16 = sadd.s32 4294967294, %s586_s14   ;;  %s586_s14 = sphi %s620_s14, %s19_s14   ;;  %s582_s13 = sphi %s618_s13, %s854_s13   ;;  %s578_s12 = sphi %s616_s12, %s853_s12   ;;  %s574_s11 = sphi %s614_s11, %s852_s11   ;;  %s570_s10 = sphi %s612_s10, %s851_s10   ;;  %s566_s9 = sphi %s610_s9, %s850_s9  }
   0x8   : > { %p79_p0 = scmp.ne.s32.totalorder %s570_s10, %s566_s9  ;;  %p644_p1 = scmp.eq.s32.totalorder %s350_s15, 0 }
   0x9   : > { %p648_p2 = scmp.eq.s32.totalorder %s350_s15, 1  ;;  %p111_p3 = scmp.eq.s32.totalorder %s351_s16, 1 }
   0xa   : > { %s836_s17 = scalar_select %p644_p1, 1, 0 }
   0xb   : > { %s837_s18 = scalar_select %p648_p2, 1, 0 }
   0xc   : > { %p654_p4 = por %p644_p1, %p79_p0  ;;  %p352_p5 = scmp.ge.s32.totalorder %s586_s14, 1 }
   0xd   : > { %p659_p6 = por %p111_p3, %p79_p0  ;;  %p118_p7 = scmp.lt.s32.totalorder %s586_s14, 3 }
   0xe   : > { %s838_s19 = scalar_select %p654_p4, 1, 0 }
   0xf   : > { %s839_s20 = scalar_select %p659_p6, 1, 0 }
  0x10   : > { %p664_p8 = pnand %p352_p5, %p118_p7  ;;  %s588_s22 = smov [#allocation2]  }
  0x11   : > { %s134_s23 = sshll.u32 %s588_s22, 4  ;;  %s28_s25 = sadd.s32 1, %s582_s13  ;;  %s135_s23 = int_to_ptr.vmem [resolvable:$true] %s134_s23 }
  0x12   : > { %s840_s21 = scalar_select %p664_p8, 1, 0 }
  0x13   : > { %p373_p9 = pneg %p664_p8  ;;  %s442_s28 = scalar_lea.hbm %s829_s0, 768 }
  0x14   : > { %p443_p12 = scmp.ne.s32.totalorder %s829_s0, %s442_s28  ;;  %p449_p5 = scmp.lt.u32.totalorder %s442_s28, %s829_s0 }
  0x15   : > { %p673_p11 = pnand %p373_p9, %p644_p1 }
  0x17   : > { %p444_p13 = pneg %p673_p11 }
  0x19   : > { %p445_p0 = pnand %p444_p13, %p443_p12 }
  0x1b   : > { %p446_p3 = pneg %p445_p0 }
  0x1d   : > { %p451_p7 = pnand %p449_p5, %p446_p3 }
  0x1f   : > { %454 = shalt.err (!%p451_p7)
}
  0x20   : > { %s455_s5 = scalar_lea.vmem %s135_s23, 768  ;;  %p463_p4 = scmp.lt.s32.totalorder %s135_s23, %s135_s23 }
  0x21   : > { %p456_p9 = scmp.ne.s32.totalorder %s135_s23, %s455_s5  ;;  %p464_p1 = scmp.lt.s32.totalorder %s455_s5, %s455_s5 }
  0x23   : > { %p458_p10 = pnand %p456_p9, %p444_p13  ;;  %p465_p8 = por %p464_p1, %p463_p4 }
  0x25   : > { %p459_p6 = pneg %p458_p10 }
  0x27   : > { %p466_p2 = pnand %p465_p8, %p459_p6 }
  0x29   : > { %469 = shalt.err (!%p466_p2)
}
  0x2a   : > { %s589_s6 = smov 256   ;;  %s590_s7 = smov 16  }
  0x2b   : > { %376 = dma.hbm_to_vmem [thread:$0]  (!%p673_p11), %s829_s0, 768, %s135_s23, [#allocation3], %s589_s6, %s589_s6, %s590_s7  }
  0x2c   : > { %p29_p1 = scmp.ge.s32.totalorder %s28_s25, 2  ;;  %s66_s16 = sadd.s32 1, %s574_s11 }
  0x2d   : > { %p73_p2 = scmp.ne.s32.totalorder %s574_s11, %s570_s10  ;;  %p74_p4 = scmp.eq.s32.totalorder %s586_s14, 0 }
  0x2e   : > { %s856_s25 = smov (%p29_p1, %s28_s25), 0  ;;  %p842_p8 = scmp.ne.s32.totalorder %s837_s18, 0 }
  0x2f   : > { %p75_p6 = por %p74_p4, %p73_p2  ;;  %s61_s24 = ssub.s32 %s582_s13, %s856_s25 }
  0x30   : > { %p705_p10 = por %p842_p8, %p73_p2  ;;  %p386_p12 = scmp.lt.s32.totalorder %s586_s14, 2 }
  0x31   : > { %p64_p13 = scmp.eq.s32.totalorder %s61_s24, 0  ;;  %s148_s26 = sand.u32 1, %s574_s11  }
  0x32   : > { %s361_s27 = smul.u32 48, %s148_s26  ;;  %p717_p11 = pnand %p386_p12, %p75_p6 }
  0x33   : > { %s714_s28 = scalar_select %p64_p13, %s574_s11, %s66_s16  }
  0x34   : > { %s362_s23 = smul.u32 768, %s582_s13  ;;  %s152_s29 = scalar_lea.vmem [#allocation5], %s361_s27 }
  0x35   : > { %s162_s30 = sshll.u32 %s152_s29, 4  ;;  %s728_s8 = scalar_lea.sflag [#allocation6], %s148_s26  ;;  %s726_s30 = int_to_ptr.vmem [resolvable:$true] %s162_s30 }
  0x36   : > { %s724_s5 = scalar_lea.hbm %s830_s1, %s362_s23  ;;  %p472_p3 = pneg %p717_p11 }
  0x37   : > { %s470_s15 = scalar_lea.hbm %s724_s5, 768  ;;  %s475_s27 = scalar_lea.hbm %s830_s1, 1536 }
  0x38   : > { %p471_p0 = scmp.ne.s32.totalorder %s724_s5, %s470_s15  ;;  %p476_p9 = scmp.lt.u32.totalorder %s724_s5, %s830_s1 }
  0x39   : > { %p477_p1 = scmp.lt.u32.totalorder %s475_s27, %s470_s15  ;;  %p479_p4 = scmp.lt.u32.totalorder %s470_s15, %s724_s5 }
  0x3a   : > { %p473_p5 = pnand %p472_p3, %p471_p0 }
  0x3b   : > { %p478_p2 = por %p477_p1, %p476_p9 }
  0x3c   : > { %p474_p7 = pneg %p473_p5 }
  0x3d   : > { %p480_p6 = por %p479_p4, %p478_p2 }
  0x3f   : > { %p481_p8 = pnand %p480_p6, %p474_p7 }
  0x41   : > { %484 = shalt.err (!%p481_p8)
}
  0x42   : > { %s485_s26 = scalar_lea.vmem %s726_s30, 768  ;;  %s591_s4 = smov [#allocation5]  }
  0x43   : > { %p486_p12 = scmp.ne.s32.totalorder %s726_s30, %s485_s26  ;;  %s490_s18 = sshll.u32 %s591_s4, 4  ;;  %s491_s18 = int_to_ptr.vmem [resolvable:$false] %s490_s18 }
  0x44   : > { %s492_s16 = scalar_lea.vmem %s491_s18, 1536  ;;  %p493_p5 = scmp.lt.s32.totalorder %s726_s30, %s491_s18 }
  0x45   : > { %p488_p13 = pnand %p486_p12, %p472_p3  ;;  %p494_p9 = scmp.lt.s32.totalorder %s492_s16, %s485_s26 }
  0x47   : > { %p489_p0 = pneg %p488_p13  ;;  %p495_p1 = por %p494_p9, %p493_p5 }
  0x49   : > { %p496_p2 = pnand %p495_p1, %p489_p0 }
  0x4b   : > { %499 = shalt.err (!%p496_p2)
}
  0x4c   : > { %380 = dma.hbm_to_vmem [thread:$0]  (!%p717_p11), %s724_s5, 768, %s726_s30, %s728_s8, %s589_s6, %s589_s6, %s590_s7  }
  0x4d   : > { %p845_p3 = scmp.ne.s32.totalorder %s840_s21, 0 }
  0x4e   : > { %p846_p7 = scmp.ne.s32.totalorder (!%p845_p3), %s836_s17, 0 }
  0x4f   : > { %174 = sbr.rel (%p845_p3) target bundleno = 118 (0x76), region = 28 }
  0x56   : > { %553 = dma.done.wait (%p846_p7), [#allocation3], 768  }
  0x57   : > { %555 = vsyncadd (%p846_p7), [#allocation3], 4294966528  ;;  %s766_s15 = sand.u32 1, %s570_s10   ;;  %p847_p4 = scmp.ne.s32.totalorder %s838_s19, 0 }
  0x58   : > { %s363_s3 = smul.u32 48, %s766_s15  ;;  %s181_s24 = scalar_lea.sflag [#allocation6], %s766_s15 }
  0x5a   : > { %s184_s27 = scalar_lea.vmem [#allocation5], %s363_s3 }
  0x5b   : > { %557 = dma.done.wait (%p847_p4), %s181_s24, 768  }
  0x5c   : > { %559 = vsyncadd (%p847_p4), %s181_s24, 4294966528  ;;  %v208_v0 = vld [vmem:[%s184_s27] sm:$0xff]  ;;  %s204_s21 = scalar_lea.vmem [#allocation7], %s363_s3  ;;  %v209_v2 = vld [vmem:[%s184_s27 + $0x8] sm:$0xff]  ;;  %s364_s6 = smul.u32 768, %s578_s12 }
  0x5d   : > { %v214_v1 = vld [vmem:[#allocation2] sm:$0xff]  ;;  %s249_s17 = sshll.u32 %s204_s21, 4  ;;  %v215_v4 = vld [vmem:[#allocation2 + $0x8] sm:$0xff]  ;;  %v216_v6 = vld [vmem:[#allocation2 + $0x10] sm:$0xff]  ;;  %s233_s30 = scalar_lea.sflag [#allocation4], %s766_s15  ;;  %s775_s17 = int_to_ptr.vmem [resolvable:$true] %s249_s17 }
  0x5e   : > { %v220_v3 = vadd.f32 %v214_v1, %v208_v0  ;;  %v210_v5 = vld [vmem:[%s184_s27 + $0x10] sm:$0xff]  ;;  %v221_v7 = vadd.f32 %v215_v4, %v209_v2  ;;  %v211_v9 = vld [vmem:[%s184_s27 + $0x18] sm:$0xff]  ;;  %v212_v11 = vld [vmem:[%s184_s27 + $0x20] sm:$0xff]  ;;  %s780_s7 = scalar_lea.hbm %s831_s2, %s364_s6  ;;  %s500_s5 = scalar_lea.vmem %s775_s17, 768 }
  0x5f   : > { %v222_v8 = vadd.f32 %v216_v6, %v210_v5  ;;  %v217_v10 = vld [vmem:[#allocation2 + $0x18] sm:$0xff]  ;;  %v218_v13 = vld [vmem:[#allocation2 + $0x20] sm:$0xff]  ;;  %v219_v15 = vld [vmem:[#allocation2 + $0x28] sm:$0xff]  ;;  %p501_p11 = scmp.ne.s32.totalorder %s775_s17, %s500_s5  ;;  %s592_s8 = smov [#allocation7]  }
  0x60   : > { %226 = vst [vmem:[%s204_s21] sm:$0xff] %v220_v3  ;;  %v223_v12 = vadd.f32 %v217_v10, %v211_v9  ;;  %v213_v14 = vld [vmem:[%s184_s27 + $0x28] sm:$0xff]  ;;  %227 = vst [vmem:[%s204_s21 + $0x8] sm:$0xff] %v221_v7  ;;  %v224_v16 = vadd.f32 %v218_v13, %v212_v11  ;;  %s504_s23 = sshll.u32 %s592_s8, 4  ;;  %s505_s23 = int_to_ptr.vmem [resolvable:$false] %s504_s23 }
  0x61   : > { %228 = vst [vmem:[%s204_s21 + $0x10] sm:$0xff] %v222_v8  ;;  %v225_v17 = vadd.f32 %v219_v15, %v213_v14  ;;  %p502_p6 = pnand %p501_p11, %p705_p10  ;;  %s506_s29 = scalar_lea.vmem %s505_s23, 1536 }
  0x62   : > { %229 = vst [vmem:[%s204_s21 + $0x18] sm:$0xff] %v223_v12  ;;  %230 = vst [vmem:[%s204_s21 + $0x20] sm:$0xff] %v224_v16  ;;  %p507_p12 = scmp.lt.s32.totalorder %s775_s17, %s505_s23  ;;  %p508_p13 = scmp.lt.s32.totalorder %s506_s29, %s500_s5 }
  0x63   : > { %231 = vst [vmem:[%s204_s21 + $0x28] sm:$0xff] %v225_v17  ;;  %p503_p8 = pneg %p502_p6 }
  0x64   : > { %p509_p0 = por %p508_p13, %p507_p12 }
  0x66   : > { %p510_p5 = pnand %p509_p0, %p503_p8 }
  0x68   : > { %513 = shalt.err (!%p510_p5)
}
  0x69   : > { %s514_s26 = scalar_lea.hbm %s780_s7, 768  ;;  %s518_s16 = scalar_lea.hbm %s831_s2, 1536 }
  0x6a   : > { %p515_p9 = scmp.ne.s32.totalorder %s780_s7, %s514_s26  ;;  %p519_p3 = scmp.lt.u32.totalorder %s780_s7, %s831_s2 }
  0x6b   : > { %p520_p7 = scmp.lt.u32.totalorder %s518_s16, %s514_s26  ;;  %p522_p11 = scmp.lt.u32.totalorder %s514_s26, %s780_s7 }
  0x6c   : > { %p516_p1 = pnand %p515_p9, %p705_p10 }
  0x6d   : > { %p521_p4 = por %p520_p7, %p519_p3 }
  0x6e   : > { %p517_p2 = pneg %p516_p1 }
  0x6f   : > { %p523_p6 = por %p522_p11, %p521_p4 }
  0x71   : > { %p524_p8 = pnand %p523_p6, %p517_p2 }
  0x73   : > { %527 = shalt.err (!%p524_p8)
}
  0x74   : > { %s593_s27 = smov 256   ;;  %s594_s21 = smov 16  }
  0x75   : > { %371 = dma.vmem_to_hbm [thread:$0]  (%p705_p10), %s775_s17, 768, %s780_s7, %s233_s30, %s593_s27, %s593_s27, %s594_s21  }
  0x76 PF: > { %s264_s6 = sand.u32 1, %s566_s9   ;;  %p848_p12 = scmp.ne.s32.totalorder %s839_s20, 0 }
  0x77   : > { %p849_p13 = scmp.ge.s32.totalorder %s586_s14, 2  ;;  %s265_s12 = scalar_lea.sflag [#allocation4], %s264_s6 }
  0x79   : > { %p382_p0 = pnand %p849_p13, %p848_p12 }
  0x7b   : > { %561 = dma.done.wait (!%p382_p0), %s265_s12, 768  }
  0x7c   : > { %563 = vsyncadd (!%p382_p0), %s265_s12, 4294966528  ;;  %s19_s14 = sadd.s32 1, %s586_s14   ;;  %s850_s9 = smov %s570_s10 }
  0x7d   : > { %p16_p5 = scmp.ge.s32.totalorder %s19_s14, 4   ;;  %s851_s10 = smov %s574_s11 }
  0x7e   : > { %s852_s11 = smov %s714_s28  ;;  %s853_s12 = smov %s582_s13 }
  0x7f   : > { %s854_s13 = smov %s856_s25  ;;  %18 = sbr.rel (!%p16_p5) target bundleno = 7 (0x7), region = 79 }
  0x86   :  { %270 = vsyncpa [#allocation3], 1 }
  0x87   :  { %272 = vsyncpa [#allocation3 + $0x1], 1 }
  0x88   :  { %273 = vsyncpa [#allocation6], 1 }
  0x89   :  { %275 = vsyncpa [#allocation6 + $0x1], 1 }
  0x8a   :  { %276 = vsyncpa [#allocation4], 1 }
  0x8b   :  { %278 = vsyncpa [#allocation4 + $0x1], 1 }

</bundles_post_ra>
